<compile_context>
chip_gen: v7x
topology: tpu7x:2x2x1
jax: 0.10.0
libtpu: 0.0.40
codegen_flags: <defaults>
</compile_context>

<pallas_src>
import jax
import jax.numpy as jnp
from jax.experimental import pallas as pl
from jax.experimental.pallas import tpu as pltpu

_MIB = 1024 * 1024


def _leaky(x, slope=0.01):
    return jnp.where(x >= 0, x, slope * x)


# --------------------------------------------------------------------------
# Pallas kernel factory: one (C, T) spatial tile of one batch element.
# --------------------------------------------------------------------------
def make_gate_kernel(use_mxu):
    def gate_kernel(x_ref, r_ref, xg_ref,
                    w1x_ref, w1r_ref, b1_ref,
                    w2_ref, b2_ref,
                    out_ref):
        x = x_ref[0].astype(jnp.float32)               # (C, T)
        r = r_ref[0].astype(jnp.float32)               # (C, T)
        C = x.shape[0]

        if use_mxu:
            # bf16 MXU matmuls with f32 accumulation (large C).
            xb = x.astype(jnp.bfloat16)
            rb = r.astype(jnp.bfloat16)
            # W1 @ cat(x, r) == W1[:, :C] @ x + W1[:, C:] @ r
            h = (jnp.dot(w1x_ref[...], xb, preferred_element_type=jnp.float32)
                 + jnp.dot(w1r_ref[...], rb, preferred_element_type=jnp.float32))
            h = _leaky(h + b1_ref[...])                # (IC, T)
            xl = jnp.dot(w2_ref[...], h.astype(jnp.bfloat16),
                         preferred_element_type=jnp.float32)
            xl = _leaky(xl + b2_ref[...])              # (C, T)
        else:
            # Tiny C: unrolled VPU broadcast-FMAs in f32 — the MXU would be
            # <2% utilized and just add push/pop latency per tile.
            w1x = w1x_ref[...]                          # (IC, C) f32
            w1r = w1r_ref[...]                          # (IC, C) f32
            w2 = w2_ref[...]                            # (C, IC) f32
            IC = w1x.shape[0]
            h = w1x[:, 0:1] * x[0:1, :] + w1r[:, 0:1] * r[0:1, :]
            for c in range(1, C):
                h = h + w1x[:, c:c + 1] * x[c:c + 1, :]
                h = h + w1r[:, c:c + 1] * r[c:c + 1, :]
            h = _leaky(h + b1_ref[...])                # (IC, T)
            xl = w2[:, 0:1] * h[0:1, :]
            for i in range(1, IC):
                xl = xl + w2[:, i:i + 1] * h[i:i + 1, :]
            xl = _leaky(xl + b2_ref[...])              # (C, T)

        # global branch result xg is precomputed per batch element: (C, 1)
        g = jax.nn.sigmoid(xl + xg_ref[0])             # broadcast along lanes

        # x*g + r*(1-g)  ==  r + g*(x - r)
        out_ref[0] = (r + g * (x - r)).astype(out_ref.dtype)

    return gate_kernel


# --------------------------------------------------------------------------
# Parameters: synthetic conv weights + BatchNorm running stats, folded.
# (All f32; the wrapper casts the local-branch weights to bf16 only on the
#  MXU path for large C.)
# --------------------------------------------------------------------------
def init_params(key, channels, r=2, eps=1e-5):
    C = channels
    IC = C // r
    keys = jax.random.split(key, 24)
    ki = iter(range(24))

    def conv_w(cout, cin):
        return jax.random.normal(keys[next(ki)], (cout, cin), jnp.float32) * 0.1

    def conv_b(n):
        return 0.1 * jax.random.normal(keys[next(ki)], (n,), jnp.float32)

    def bn_fold(n):
        gamma = 1.0 + 0.1 * jax.random.normal(keys[next(ki)], (n,), jnp.float32)
        beta = 0.1 * jax.random.normal(keys[next(ki)], (n,), jnp.float32)
        mean = 0.1 * jax.random.normal(keys[next(ki)], (n,), jnp.float32)
        var = jax.random.uniform(keys[next(ki)], (n,), jnp.float32, 0.5, 1.5)
        scale = gamma / jnp.sqrt(var + eps)
        shift = beta - mean * scale
        return scale, shift

    # ---- local branch: BN scale folded into weight rows, shift+bias -> bias
    w1 = conv_w(IC, 2 * C); b1c = conv_b(IC); s1, sh1 = bn_fold(IC)
    w1s = w1 * s1[:, None]
    b1 = (s1 * b1c + sh1)[:, None]                 # (IC, 1) f32
    w2 = conv_w(C, IC);     b2c = conv_b(C);  s2, sh2 = bn_fold(C)
    w2s = w2 * s2[:, None]
    b2 = (s2 * b2c + sh2)[:, None]                 # (C, 1) f32

    # ---- global branch (evaluated in the wrapper, f32)
    g1 = conv_w(IC, 2 * C); bg1c = conv_b(IC); sg1, shg1 = bn_fold(IC)
    g1s = g1 * sg1[:, None]
    bg1 = sg1 * bg1c + shg1                        # (IC,)
    g2 = conv_w(C, IC);     bg2c = conv_b(C);  sg2, shg2 = bn_fold(C)
    g2s = g2 * sg2[:, None]
    bg2 = sg2 * bg2c + shg2                        # (C,)

    return (w1s[:, :C],                            # w1x (IC, C) f32
            w1s[:, C:],                            # w1r (IC, C) f32
            b1,                                    # (IC, 1)     f32
            w2s,                                   # (C, IC)     f32
            b2,                                    # (C, 1)      f32
            g1s[:, :C], g1s[:, C:], bg1, g2s, bg2)  # global branch, f32


# --------------------------------------------------------------------------
# VMEM accounting + spatial tile choice (generation-aware).
# --------------------------------------------------------------------------
def _vmem_capacity_bytes():
    try:
        info = pltpu.get_tpu_info()
        for attr in ("vmem_capacity_bytes", "vmem_bytes", "vmem_size_bytes"):
            cap = getattr(info, attr, None)
            if cap:
                return int(cap)
    except Exception:
        pass
    return 64 * _MIB   # conservative fallback (v7x has the smallest VMEM)


def _vmem_usage_bytes(t, c, ic, in_bytes, out_bytes, use_mxu):
    # double-buffered x / r input tiles and output tile
    usage = 2 * (2 * c * t * in_bytes) + 2 * (c * t * out_bytes)
    # xg tile (tiny) + resident weights/biases (double-buffered)
    wbytes = 2 if use_mxu else 4
    usage += 2 * (c * 4) + 2 * (3 * ic * c * wbytes + (ic + c) * 4)
    # per-step intermediates: ~3 live (C,T) f32 (g, xl, blend temp) + h (IC,T)
    usage += 3 * c * t * 4 + ic * t * 4
    if use_mxu:
        usage += 2 * c * t * 2 + ic * t * 2       # bf16 staging copies
    return usage


def _pick_tile(hw, c, ic, in_bytes, out_bytes, use_mxu, budget_bytes, batch):
    # no benefit in a tile wider than the (128-rounded) image
    hw128 = pl.cdiv(hw, 128) * 128
    t = min(32768, hw128)
    t = max(128, (t // 128) * 128)
    # largest multiple of 128 whose estimated footprint fits the budget
    while t > 128 and _vmem_usage_bytes(t, c, ic, in_bytes, out_bytes,
                                        use_mxu) > budget_bytes:
        t -= 128
    # keep both TensorCores fed on megacore parts: aim for >= 8 grid steps,
    # but never shrink below 512 lanes (per-step overhead dominates there).
    while batch * pl.cdiv(hw, t) < 8:
        t_half = ((t // 2) // 128) * 128
        if t_half < 512:
            break
        t = t_half
    return t


# --------------------------------------------------------------------------
# Wrapper
# --------------------------------------------------------------------------
def gate_pallas(x, residual, params):
    B, C, H, W = x.shape
    HW = H * W
    xf = x.reshape(B, C, HW)                       # free reshape, no transpose
    rf = residual.reshape(B, C, HW)

    (w1x, w1r, b1, w2, b2, g1x, g1r, bg1, g2, bg2) = params
    IC = w1x.shape[0]

    use_mxu = C >= 32                              # tiny C -> VPU FMAs, f32 weights

    # ---- global attention branch: tiny (B,C)-sized math, done in plain JAX.
    # This is a second full HBM read of x/r; fuse the mean into the upstream
    # producer of x/residual when integrating into a larger model.
    mx = jnp.mean(xf.astype(jnp.float32), axis=2)  # (B, C)
    mr = jnp.mean(rf.astype(jnp.float32), axis=2)
    hg = _leaky(mx @ g1x.T + mr @ g1r.T + bg1)     # (B, IC)
    xg = _leaky(hg @ g2.T + bg2)                   # (B, C)
    xg = xg.reshape(B, C, 1).astype(jnp.float32)

    wdt = jnp.bfloat16 if use_mxu else jnp.float32
    w1x_k = w1x.astype(wdt)
    w1r_k = w1r.astype(wdt)
    w2_k = w2.astype(wdt)

    in_bytes = jnp.dtype(x.dtype).itemsize         # bf16 inputs -> half the traffic
    out_bytes = in_bytes

    cap = _vmem_capacity_bytes()
    budget = (40 * _MIB) if cap <= 64 * _MIB else (96 * _MIB)
    T = _pick_tile(HW, C, IC, in_bytes, out_bytes, use_mxu, budget, B)
    n_tiles = int(pl.cdiv(HW, T))
    grid = (B, n_tiles)

    usage = _vmem_usage_bytes(T, C, IC, in_bytes, out_bytes, use_mxu)
    vmem_limit = int(min(cap, max(32 * _MIB, usage + 8 * _MIB)))

    tile_spec = pl.BlockSpec((1, C, T), lambda b, s: (b, 0, s))
    xg_spec = pl.BlockSpec((1, C, 1), lambda b, s: (b, 0, 0))

    def const2d(shape):
        return pl.BlockSpec(shape, lambda b, s: (0, 0))

    out = pl.pallas_call(
        make_gate_kernel(use_mxu),
        out_shape=jax.ShapeDtypeStruct((B, C, HW), x.dtype),
        grid_spec=pltpu.PrefetchScalarGridSpec(
            num_scalar_prefetch=0,
            grid=grid,
            in_specs=[tile_spec, tile_spec, xg_spec,
                      const2d((IC, C)), const2d((IC, C)), const2d((IC, 1)),
                      const2d((C, IC)), const2d((C, 1))],
            out_specs=tile_spec,
        ),
        compiler_params=pltpu.CompilerParams(
            dimension_semantics=("parallel", "parallel"),
            vmem_limit_bytes=vmem_limit,
        ),
    )(xf, rf, xg, w1x_k, w1r_k, b1, w2_k, b2)

    return out.reshape(B, C, H, W)


# --------------------------------------------------------------------------
# Plain-JAX reference (f32) for a sanity check.
# --------------------------------------------------------------------------
def gate_reference(x, residual, params):
    B, C, H, W = x.shape
    HW = H * W
    (w1x, w1r, b1, w2, b2, g1x, g1r, bg1, g2, bg2) = params
    xf = x.reshape(B, C, HW).astype(jnp.float32)
    rf = residual.reshape(B, C, HW).astype(jnp.float32)
    w1x32 = w1x.astype(jnp.float32)
    w1r32 = w1r.astype(jnp.float32)
    w232 = w2.astype(jnp.float32)

    h = _leaky(jnp.einsum('ic,bct->bit', w1x32, xf)
               + jnp.einsum('ic,bct->bit', w1r32, rf) + b1)
    xl = _leaky(jnp.einsum('ci,bit->bct', w232, h) + b2)

    mx = xf.mean(axis=2)
    mr = rf.mean(axis=2)
    hg = _leaky(mx @ g1x.T + mr @ g1r.T + bg1)
    xg = _leaky(hg @ g2.T + bg2)

    g = jax.nn.sigmoid(xl + xg[:, :, None])
    out = rf + g * (xf - rf)
    return out.reshape(B, C, H, W).astype(x.dtype)


if __name__ == "__main__":
    B, C, H, W = 2, 4, 16, 16
    key = jax.random.PRNGKey(0)
    kx, kr, kp = jax.random.split(key, 3)

    x = jax.random.normal(kx, (B, C, H, W), jnp.float32)
    residual = jax.random.normal(kr, (B, C, H, W), jnp.float32)
    params = init_params(kp, C, r=2)

    out = gate_pallas(x, residual, params)
    jax.block_until_ready(out)
    assert out.shape == (B, C, H, W)

    ref = gate_reference(x, residual, params)
    # tiny-C path runs fully in f32 (tight tolerance); large-C MXU path uses
    # bf16 operands and would need a looser tolerance (re-validate at prod C).
    tol = 5e-2 if C >= 32 else 1e-4
    err = float(jnp.max(jnp.abs(out.astype(jnp.float32) - ref.astype(jnp.float32))))
    assert err < tol, f"max abs err {err} > {tol}"

    print("KERNEL_OK")
</pallas_src>

<mosaic_0001>
module attributes {stable_mosaic.version = 11 : i64} {
  func.func @gate_kernel(%arg0: i32, %arg1: i32, %arg2: memref<1x4x256xf32, #tpu.memory_space<vmem>>, %arg3: memref<1x4x256xf32, #tpu.memory_space<vmem>>, %arg4: memref<1x4x1xf32, #tpu.memory_space<vmem>>, %arg5: memref<2x4xf32, #tpu.memory_space<vmem>>, %arg6: memref<2x4xf32, #tpu.memory_space<vmem>>, %arg7: memref<2x1xf32, #tpu.memory_space<vmem>>, %arg8: memref<4x2xf32, #tpu.memory_space<vmem>>, %arg9: memref<4x1xf32, #tpu.memory_space<vmem>>, %arg10: memref<1x4x256xf32, #tpu.memory_space<vmem>>) attributes {dimension_semantics = [#tpu.dimension_semantics<parallel>, #tpu.dimension_semantics<parallel>], iteration_bounds = array<i64: 2, 1>, scalar_prefetch = 0 : i64, scratch_operands = 0 : i64, tpu.core_type = #tpu.core_type<tc>, window_params = [{transform_indices = @transform_0, window_bounds = array<i64: 1, 4, 256>}, {transform_indices = @transform_1, window_bounds = array<i64: 1, 4, 256>}, {transform_indices = @transform_2, window_bounds = array<i64: 1, 4, 1>}, {pipeline_mode = #tpu.pipeline_mode<synchronous>, transform_indices = @transform_3, window_bounds = array<i64: 2, 4>}, {pipeline_mode = #tpu.pipeline_mode<synchronous>, transform_indices = @transform_4, window_bounds = array<i64: 2, 4>}, {pipeline_mode = #tpu.pipeline_mode<synchronous>, transform_indices = @transform_5, window_bounds = array<i64: 2, 1>}, {pipeline_mode = #tpu.pipeline_mode<synchronous>, transform_indices = @transform_6, window_bounds = array<i64: 4, 2>}, {pipeline_mode = #tpu.pipeline_mode<synchronous>, transform_indices = @transform_7, window_bounds = array<i64: 4, 1>}, {transform_indices = @transform_8, window_bounds = array<i64: 1, 4, 256>}]} {
    %c0 = arith.constant 0 : index
    %c0_0 = arith.constant 0 : index
    %c0_1 = arith.constant 0 : index
    %0 = vector.load %arg2[%c0, %c0_0, %c0_1] : memref<1x4x256xf32, #tpu.memory_space<vmem>>, vector<1x4x256xf32>
    %1 = vector.shape_cast %0 : vector<1x4x256xf32> to vector<4x256xf32>
    %c0_2 = arith.constant 0 : index
    %c0_3 = arith.constant 0 : index
    %c0_4 = arith.constant 0 : index
    %2 = vector.load %arg3[%c0_2, %c0_3, %c0_4] : memref<1x4x256xf32, #tpu.memory_space<vmem>>, vector<1x4x256xf32>
    %3 = vector.shape_cast %2 : vector<1x4x256xf32> to vector<4x256xf32>
    %c0_5 = arith.constant 0 : index
    %c0_6 = arith.constant 0 : index
    %4 = vector.load %arg5[%c0_5, %c0_6] : memref<2x4xf32, #tpu.memory_space<vmem>>, vector<2x4xf32>
    %c0_7 = arith.constant 0 : index
    %c0_8 = arith.constant 0 : index
    %5 = vector.load %arg6[%c0_7, %c0_8] : memref<2x4xf32, #tpu.memory_space<vmem>>, vector<2x4xf32>
    %c0_9 = arith.constant 0 : index
    %c0_10 = arith.constant 0 : index
    %6 = vector.load %arg8[%c0_9, %c0_10] : memref<4x2xf32, #tpu.memory_space<vmem>>, vector<4x2xf32>
    %7 = vector.extract_strided_slice %4 {offsets = [0, 0], sizes = [2, 1], strides = [1, 1]} : vector<2x4xf32> to vector<2x1xf32>
    %8 = vector.extract_strided_slice %1 {offsets = [0, 0], sizes = [1, 256], strides = [1, 1]} : vector<4x256xf32> to vector<1x256xf32>
    %9 = vector.broadcast %7 : vector<2x1xf32> to vector<2x256xf32>
    %10 = vector.broadcast %8 : vector<1x256xf32> to vector<2x256xf32>
    %11 = arith.mulf %9, %10 : vector<2x256xf32>
    %12 = vector.extract_strided_slice %5 {offsets = [0, 0], sizes = [2, 1], strides = [1, 1]} : vector<2x4xf32> to vector<2x1xf32>
    %13 = vector.extract_strided_slice %3 {offsets = [0, 0], sizes = [1, 256], strides = [1, 1]} : vector<4x256xf32> to vector<1x256xf32>
    %14 = vector.broadcast %12 : vector<2x1xf32> to vector<2x256xf32>
    %15 = vector.broadcast %13 : vector<1x256xf32> to vector<2x256xf32>
    %16 = arith.mulf %14, %15 : vector<2x256xf32>
    %17 = arith.addf %11, %16 : vector<2x256xf32>
    %18 = vector.extract_strided_slice %4 {offsets = [0, 1], sizes = [2, 1], strides = [1, 1]} : vector<2x4xf32> to vector<2x1xf32>
    %19 = vector.extract_strided_slice %1 {offsets = [1, 0], sizes = [1, 256], strides = [1, 1]} : vector<4x256xf32> to vector<1x256xf32>
    %20 = vector.broadcast %18 : vector<2x1xf32> to vector<2x256xf32>
    %21 = vector.broadcast %19 : vector<1x256xf32> to vector<2x256xf32>
    %22 = arith.mulf %20, %21 : vector<2x256xf32>
    %23 = arith.addf %17, %22 : vector<2x256xf32>
    %24 = vector.extract_strided_slice %5 {offsets = [0, 1], sizes = [2, 1], strides = [1, 1]} : vector<2x4xf32> to vector<2x1xf32>
    %25 = vector.extract_strided_slice %3 {offsets = [1, 0], sizes = [1, 256], strides = [1, 1]} : vector<4x256xf32> to vector<1x256xf32>
    %26 = vector.broadcast %24 : vector<2x1xf32> to vector<2x256xf32>
    %27 = vector.broadcast %25 : vector<1x256xf32> to vector<2x256xf32>
    %28 = arith.mulf %26, %27 : vector<2x256xf32>
    %29 = arith.addf %23, %28 : vector<2x256xf32>
    %30 = vector.extract_strided_slice %4 {offsets = [0, 2], sizes = [2, 1], strides = [1, 1]} : vector<2x4xf32> to vector<2x1xf32>
    %31 = vector.extract_strided_slice %1 {offsets = [2, 0], sizes = [1, 256], strides = [1, 1]} : vector<4x256xf32> to vector<1x256xf32>
    %32 = vector.broadcast %30 : vector<2x1xf32> to vector<2x256xf32>
    %33 = vector.broadcast %31 : vector<1x256xf32> to vector<2x256xf32>
    %34 = arith.mulf %32, %33 : vector<2x256xf32>
    %35 = arith.addf %29, %34 : vector<2x256xf32>
    %36 = vector.extract_strided_slice %5 {offsets = [0, 2], sizes = [2, 1], strides = [1, 1]} : vector<2x4xf32> to vector<2x1xf32>
    %37 = vector.extract_strided_slice %3 {offsets = [2, 0], sizes = [1, 256], strides = [1, 1]} : vector<4x256xf32> to vector<1x256xf32>
    %38 = vector.broadcast %36 : vector<2x1xf32> to vector<2x256xf32>
    %39 = vector.broadcast %37 : vector<1x256xf32> to vector<2x256xf32>
    %40 = arith.mulf %38, %39 : vector<2x256xf32>
    %41 = arith.addf %35, %40 : vector<2x256xf32>
    %42 = vector.extract_strided_slice %4 {offsets = [0, 3], sizes = [2, 1], strides = [1, 1]} : vector<2x4xf32> to vector<2x1xf32>
    %43 = vector.extract_strided_slice %1 {offsets = [3, 0], sizes = [1, 256], strides = [1, 1]} : vector<4x256xf32> to vector<1x256xf32>
    %44 = vector.broadcast %42 : vector<2x1xf32> to vector<2x256xf32>
    %45 = vector.broadcast %43 : vector<1x256xf32> to vector<2x256xf32>
    %46 = arith.mulf %44, %45 : vector<2x256xf32>
    %47 = arith.addf %41, %46 : vector<2x256xf32>
    %48 = vector.extract_strided_slice %5 {offsets = [0, 3], sizes = [2, 1], strides = [1, 1]} : vector<2x4xf32> to vector<2x1xf32>
    %49 = vector.extract_strided_slice %3 {offsets = [3, 0], sizes = [1, 256], strides = [1, 1]} : vector<4x256xf32> to vector<1x256xf32>
    %50 = vector.broadcast %48 : vector<2x1xf32> to vector<2x256xf32>
    %51 = vector.broadcast %49 : vector<1x256xf32> to vector<2x256xf32>
    %52 = arith.mulf %50, %51 : vector<2x256xf32>
    %53 = arith.addf %47, %52 : vector<2x256xf32>
    %c0_11 = arith.constant 0 : index
    %c0_12 = arith.constant 0 : index
    %54 = vector.load %arg7[%c0_11, %c0_12] : memref<2x1xf32, #tpu.memory_space<vmem>>, vector<2x1xf32>
    %55 = vector.broadcast %54 : vector<2x1xf32> to vector<2x256xf32>
    %56 = arith.addf %53, %55 : vector<2x256xf32>
    %cst = arith.constant 0.000000e+00 : f32
    %57 = vector.broadcast %cst : f32 to vector<2x256xf32>
    %58 = arith.cmpf oge, %56, %57 : vector<2x256xf32>
    %cst_13 = arith.constant 0.00999999977 : f32
    %59 = vector.broadcast %cst_13 : f32 to vector<2x256xf32>
    %60 = arith.mulf %59, %56 : vector<2x256xf32>
    %61 = arith.select %58, %56, %60 : vector<2x256xi1>, vector<2x256xf32>
    %62 = vector.extract_strided_slice %6 {offsets = [0, 0], sizes = [4, 1], strides = [1, 1]} : vector<4x2xf32> to vector<4x1xf32>
    %63 = vector.extract_strided_slice %61 {offsets = [0, 0], sizes = [1, 256], strides = [1, 1]} : vector<2x256xf32> to vector<1x256xf32>
    %64 = vector.broadcast %62 : vector<4x1xf32> to vector<4x256xf32>
    %65 = vector.broadcast %63 : vector<1x256xf32> to vector<4x256xf32>
    %66 = arith.mulf %64, %65 : vector<4x256xf32>
    %67 = vector.extract_strided_slice %6 {offsets = [0, 1], sizes = [4, 1], strides = [1, 1]} : vector<4x2xf32> to vector<4x1xf32>
    %68 = vector.extract_strided_slice %61 {offsets = [1, 0], sizes = [1, 256], strides = [1, 1]} : vector<2x256xf32> to vector<1x256xf32>
    %69 = vector.broadcast %67 : vector<4x1xf32> to vector<4x256xf32>
    %70 = vector.broadcast %68 : vector<1x256xf32> to vector<4x256xf32>
    %71 = arith.mulf %69, %70 : vector<4x256xf32>
    %72 = arith.addf %66, %71 : vector<4x256xf32>
    %c0_14 = arith.constant 0 : index
    %c0_15 = arith.constant 0 : index
    %73 = vector.load %arg9[%c0_14, %c0_15] : memref<4x1xf32, #tpu.memory_space<vmem>>, vector<4x1xf32>
    %74 = vector.broadcast %73 : vector<4x1xf32> to vector<4x256xf32>
    %75 = arith.addf %72, %74 : vector<4x256xf32>
    %cst_16 = arith.constant 0.000000e+00 : f32
    %76 = vector.broadcast %cst_16 : f32 to vector<4x256xf32>
    %77 = arith.cmpf oge, %75, %76 : vector<4x256xf32>
    %cst_17 = arith.constant 0.00999999977 : f32
    %78 = vector.broadcast %cst_17 : f32 to vector<4x256xf32>
    %79 = arith.mulf %78, %75 : vector<4x256xf32>
    %80 = arith.select %77, %75, %79 : vector<4x256xi1>, vector<4x256xf32>
    %c0_18 = arith.constant 0 : index
    %c0_19 = arith.constant 0 : index
    %c0_20 = arith.constant 0 : index
    %81 = vector.load %arg4[%c0_18, %c0_19, %c0_20] : memref<1x4x1xf32, #tpu.memory_space<vmem>>, vector<1x4x1xf32>
    %82 = vector.shape_cast %81 : vector<1x4x1xf32> to vector<4x1xf32>
    %83 = vector.broadcast %82 : vector<4x1xf32> to vector<4x256xf32>
    %84 = arith.addf %80, %83 : vector<4x256xf32>
    %85 = arith.negf %84 : vector<4x256xf32>
    %86 = math.exp %85 : vector<4x256xf32>
    %cst_21 = arith.constant 1.000000e+00 : f32
    %87 = vector.broadcast %cst_21 : f32 to vector<4x256xf32>
    %88 = arith.addf %87, %86 : vector<4x256xf32>
    %89 = arith.divf %87, %88 : vector<4x256xf32>
    %90 = arith.subf %1, %3 : vector<4x256xf32>
    %91 = arith.mulf %89, %90 : vector<4x256xf32>
    %92 = arith.addf %3, %91 : vector<4x256xf32>
    %c0_22 = arith.constant 0 : index
    %c0_23 = arith.constant 0 : index
    %c0_24 = arith.constant 0 : index
    %93 = vector.load %arg10[%c0_22, %c0_23, %c0_24] : memref<1x4x256xf32, #tpu.memory_space<vmem>>, vector<1x4x256xf32>
    %94 = vector.shape_cast %93 : vector<1x4x256xf32> to vector<4x256xf32>
    %95 = vector.shape_cast %92 : vector<4x256xf32> to vector<1x4x256xf32>
    tpu.vector_store %arg10[%c0_22, %c0_23, %c0_24], %95 {strides = array<i32>} : memref<1x4x256xf32, #tpu.memory_space<vmem>>, vector<1x4x256xf32>,
    return
  }
  func.func @transform_0(%arg0: i32, %arg1: i32) -> (i32, i32, i32) {
    %c0_i32 = arith.constant 0 : i32
    %c0_i32_0 = arith.constant 0 : i32
    return %arg0, %c0_i32, %arg1 : i32, i32, i32
  }
  func.func @transform_1(%arg0: i32, %arg1: i32) -> (i32, i32, i32) {
    %c0_i32 = arith.constant 0 : i32
    %c0_i32_0 = arith.constant 0 : i32
    return %arg0, %c0_i32, %arg1 : i32, i32, i32
  }
  func.func @transform_2(%arg0: i32, %arg1: i32) -> (i32, i32, i32) {
    %c0_i32 = arith.constant 0 : i32
    %c0_i32_0 = arith.constant 0 : i32
    %c0_i32_1 = arith.constant 0 : i32
    return %arg0, %c0_i32, %c0_i32_0 : i32, i32, i32
  }
  func.func @transform_3(%arg0: i32, %arg1: i32) -> (i32, i32) {
    %c0_i32 = arith.constant 0 : i32
    %c0_i32_0 = arith.constant 0 : i32
    %c0_i32_1 = arith.constant 0 : i32
    return %c0_i32, %c0_i32_0 : i32, i32
  }
  func.func @transform_4(%arg0: i32, %arg1: i32) -> (i32, i32) {
    %c0_i32 = arith.constant 0 : i32
    %c0_i32_0 = arith.constant 0 : i32
    %c0_i32_1 = arith.constant 0 : i32
    return %c0_i32, %c0_i32_0 : i32, i32
  }
  func.func @transform_5(%arg0: i32, %arg1: i32) -> (i32, i32) {
    %c0_i32 = arith.constant 0 : i32
    %c0_i32_0 = arith.constant 0 : i32
    %c0_i32_1 = arith.constant 0 : i32
    return %c0_i32, %c0_i32_0 : i32, i32
  }
  func.func @transform_6(%arg0: i32, %arg1: i32) -> (i32, i32) {
    %c0_i32 = arith.constant 0 : i32
    %c0_i32_0 = arith.constant 0 : i32
    %c0_i32_1 = arith.constant 0 : i32
    return %c0_i32, %c0_i32_0 : i32, i32
  }
  func.func @transform_7(%arg0: i32, %arg1: i32) -> (i32, i32) {
    %c0_i32 = arith.constant 0 : i32
    %c0_i32_0 = arith.constant 0 : i32
    %c0_i32_1 = arith.constant 0 : i32
    return %c0_i32, %c0_i32_0 : i32, i32
  }
  func.func @transform_8(%arg0: i32, %arg1: i32) -> (i32, i32, i32) {
    %c0_i32 = arith.constant 0 : i32
    %c0_i32_0 = arith.constant 0 : i32
    return %arg0, %c0_i32, %arg1 : i32, i32, i32
  }
}

</mosaic_0001>

<bundles_post_ra>
// kernel: tpu_custom_call.1
= control target key start
LH: loop header
LB: loop body
LE: loop exit
PB: predicated region body
PF: predicated region fallthrough
CT: control target
= control target key end

     0   :  { %s1348_s0 = inlined_call_operand.vmem [shape: f32[2,4,256], index: 0, kind: input, shape index: {}]   ;;  %s1349_s1 = inlined_call_operand.hbm [shape: f32[2,4,256], index: 1, kind: input, shape index: {}]   ;;  %s1350_s2 = inlined_call_operand.vmem [shape: f32[2,4,1], index: 2, kind: input, shape index: {}]   ;;  %s1351_s3 = inlined_call_operand.vmem [shape: f32[2,4], index: 3, kind: input, shape index: {}]   ;;  %s1352_s4 = inlined_call_operand.vmem [shape: f32[2,4], index: 4, kind: input, shape index: {}]   ;;  %s1353_s5 = inlined_call_operand.vmem [shape: f32[2,1], index: 5, kind: input, shape index: {}]   ;;  %s1354_s6 = inlined_call_operand.vmem [shape: f32[4,2], index: 6, kind: input, shape index: {}]   ;;  %s1355_s7 = inlined_call_operand.vmem [shape: f32[4,1], index: 7, kind: input, shape index: {}]   ;;  %s1356_s8 = inlined_call_operand.hbm [shape: f32[2,4,256], index: 8, kind: output, shape index: {}]  }
   0x1   :  { %1359 = sst [smem:[#allocation8_spill]] %s1349_s1 }
   0x2   :  { %13 = vsyncpa [#allocation3], 0 }
   0x3   :  { %15 = vsyncpa [#allocation3 + $0x1], 0 }
   0x4   :  { %16 = vsyncpa [#allocation4], 0 }
   0x5   :  { %18 = vsyncpa [#allocation4 + $0x1], 0  ;;  %s1103_s27 = smov 0   ;;  %s1105_s28 = smov 0  }
   0x6   :  { %s1107_s29 = smov 0   ;;  %s1109_s30 = smov 0  }
   0x7   :  { %s1111_s9 = smov 0   ;;  %s1113_s10 = smov 0  }
   0x8 LB: > { %s832_s11 = sadd.s32 4294967295, %s1050_s10   ;;  %s833_s12 = sadd.s32 4294967294, %s1050_s10   ;;  %s1050_s10 = sphi %s1113_s10, %s24_s10   ;;  %s1046_s9 = sphi %s1111_s9, %s1376_s9   ;;  %s1042_s30 = sphi %s1109_s30, %s1375_s30   ;;  %s1038_s29 = sphi %s1107_s29, %s1374_s29   ;;  %s1034_s28 = sphi %s1105_s28, %s1373_s28   ;;  %s1030_s27 = sphi %s1103_s27, %s1372_s27  }
   0x9   : > { %s36_s13 = sadd.s32 1, %s1046_s9  ;;  %s73_s14 = sadd.s32 1, %s1038_s29 }
   0xa   : > { %p38_p0 = scmp.ge.s32.totalorder %s36_s13, 2  ;;  %p80_p1 = scmp.ne.s32.totalorder %s1038_s29, %s1034_s28 }
   0xb   : > { %p81_p2 = scmp.eq.s32.totalorder %s1050_s10, 0  ;;  %p86_p3 = scmp.ne.s32.totalorder %s1034_s28, %s1030_s27 }
   0xc   : > { %s1378_s13 = smov (%p38_p0, %s36_s13), 0  ;;  %p87_p5 = scmp.eq.s32.totalorder %s832_s11, 0 }
   0xd   : > { %p1144_p4 = por %p81_p2, %p80_p1  ;;  %s68_s16 = ssub.s32 %s1046_s9, %s1378_s13 }
   0xe   : > { %p243_p6 = scmp.eq.s32.totalorder %s832_s11, 1  ;;  %p71_p7 = scmp.eq.s32.totalorder %s68_s16, 0 }
   0xf   : > { %p1150_p8 = por %p87_p5, %p86_p3  ;;  %p249_p10 = scmp.eq.s32.totalorder %s833_s12, 1 }
  0x10   : > { %p1154_p9 = por %p243_p6, %p80_p1  ;;  %p867_p13 = scmp.lt.s32.totalorder %s1050_s10, 2 }
  0x11   : > { %s1159_s19 = scalar_select %p71_p7, %s1038_s29, %s73_s14  }
  0x12   : > { %s1362_s18 = scalar_select %p1154_p9, 1, 0 }
  0x13   : > { %p1161_p11 = por %p249_p10, %p86_p3  ;;  %s297_s21 = sand.u32 1, %s1038_s29  }
  0x14   : > { %s836_s22 = sshll.u32 %s297_s21, 3  ;;  %s852_s23 = sshll.u32 %s1046_s9, 7 }
  0x15   : > { %s1363_s20 = scalar_select %p1161_p11, 1, 0 }
  0x16   : > { %s1364_s1 = sld [smem:[#allocation8_spill]]  ;;  %s301_s11 = scalar_lea.vmem [#allocation2], %s836_s22 }
  0x17   : > { %s311_s12 = sshll.u32 %s301_s11, 4  ;;  %p1178_p0 = pnand %p867_p13, %p1144_p4  ;;  %s1174_s12 = int_to_ptr.vmem [resolvable:$true] %s311_s12 }
  0x18   : > { %s298_s16 = scalar_lea.sflag [#allocation3], %s297_s21 }
  0x19   : > { %p940_p5 = pneg %p1178_p0 }
  0x1c   : > { %s1172_s26 = scalar_lea.hbm %s1364_s1, %s852_s23  ;;  %s943_s15 = scalar_lea.hbm %s1364_s1, 256 }
  0x1d   : > { %s938_s23 = scalar_lea.hbm %s1172_s26, 128  ;;  %p944_p4 = scmp.lt.u32.totalorder %s1172_s26, %s1364_s1 }
  0x1e   : > { %p939_p3 = scmp.ne.s32.totalorder %s1172_s26, %s938_s23  ;;  %p945_p10 = scmp.lt.u32.totalorder %s943_s15, %s938_s23 }
  0x1f   : > { %p947_p12 = scmp.lt.u32.totalorder %s938_s23, %s1172_s26 }
  0x20   : > { %p941_p6 = pnand %p940_p5, %p939_p3  ;;  %p946_p13 = por %p945_p10, %p944_p4 }
  0x22   : > { %p942_p7 = pneg %p941_p6  ;;  %p948_p1 = por %p947_p12, %p946_p13 }
  0x24   : > { %p949_p2 = pnand %p948_p1, %p942_p7 }
  0x26   : > { %952 = shalt.err (!%p949_p2)
}
  0x27   : > { %s953_s21 = scalar_lea.vmem %s1174_s12, 128  ;;  %s1052_s22 = smov [#allocation2]  }
  0x28   : > { %p954_p3 = scmp.ne.s32.totalorder %s1174_s12, %s953_s21  ;;  %s958_s24 = sshll.u32 %s1052_s22, 4  ;;  %s959_s24 = int_to_ptr.vmem [resolvable:$false] %s958_s24 }
  0x29   : > { %s960_s25 = scalar_lea.vmem %s959_s24, 256  ;;  %p961_p9 = scmp.lt.s32.totalorder %s1174_s12, %s959_s24 }
  0x2a   : > { %p956_p6 = pnand %p954_p3, %p940_p5  ;;  %p962_p4 = scmp.lt.s32.totalorder %s960_s25, %s953_s21 }
  0x2c   : > { %p957_p11 = pneg %p956_p6  ;;  %p963_p10 = por %p962_p4, %p961_p9 }
  0x2e   : > { %p964_p12 = pnand %p963_p10, %p957_p11 }
  0x30   : > { %967 = shalt.err (!%p964_p12)
}
  0x31   : > { %862 = dma.hbm_to_vmem [thread:$0]  (!%p1178_p0), %s1172_s26, 128, %s1174_s12, %s298_s16  }
  0x32   : > { %p1366_p1 = scmp.lt.s32.totalorder %s1050_s10, 3  ;;  %p1367_p2 = scmp.ge.s32.totalorder %s1050_s10, 1 }
  0x34   : > { %p324_p5 = pnand %p1367_p2, %p1366_p1 }
  0x35   : > { %s1214_s23 = sand.u32 (!%p324_p5), 1, %s1034_s28  }
  0x36   : > { %327 = sbr.rel (%p324_p5) target bundleno = 277 (0x115), region = 52  ;;  %s1358_s15 = sshll.u32 (!%p324_p5), %s1214_s23, 3 }
  0x37   : > { %s330_s11 = scalar_lea.sflag (!%p324_p5), [#allocation3], %s1214_s23  ;;  %s1220_s14 = scalar_lea.vmem (!%p324_p5), [#allocation2], %s1358_s15 }
  0x3d   : > { %1021 = dma.done.wait (%p1150_p8), %s330_s11, 128  }
  0x3e   : > { %1023 = vsyncadd (%p1150_p8), %s330_s11, 4294967168  ;;  %v1053_v0 = vmov 1   ;;  %v1054_v1 = vmov 0   ;;  %v397_v2 = vld [vmem:[%s1351_s3] sm:$0x3]  ;;  %v1055_v4 = vmov 2   ;;  %v406_v10 = vlaneseq }
  0x3f   : > { %922 = vset.pattern.permute.xlu1 %v1053_v0  ;;  %921 = vset.pattern.permute.xlu0 %v1054_v1  ;;  %v398_v3 = vld [vmem:[%s1352_s4] sm:$0x3]  ;;  %v1056_v5 = vmov 3   ;;  %p380_p8 = scmp.lt.s32.totalorder %s1042_s30, 1  ;;  %s1368_s15 = sshll.u32 %s1214_s23, 3 }
  0x40   : > { %455 = vperm.xlu1 %922, %v397_v2   ;;  %402 = vperm.xlu0 %921, %v397_v2   ;;  %v610_v6 = vld [vmem:[%s1353_s5] sm:$0x3]  ;;  %v407_v11 = vshrl.u32 %v406_v10, 7  ;;  %s702_s21 = scalar_lea.sflag [#allocation4], %s1214_s23  ;;  %p1369_p11 = scmp.ne.s32.totalorder %s1362_s18, 0 }
  0x41   : > { %v399_v7 = vld [vmem:[%s1354_s6] sm:$0xf]  ;;  %s381_s11 = scalar_select %p380_p8, %s1042_s30, 1 }
  0x42   : > { %v655_v8 = vld [vmem:[%s1355_s7] sm:$0xf]  ;;  %v1249_v12 = vsub.s32 0, %v407_v11  ;;  %v412_v13 = vsub.s32 4, %v407_v11  ;;  %v1256_v16 = vsub.s32 1, %v407_v11  ;;  %v464_v17 = vsub.s32 5, %v407_v11 }
  0x43   : > { %s844_s26 = sshll.u32 %s381_s11, 2  ;;  %s853_s24 = sshll.u32 %s381_s11, 3  ;;  %v1254_v15 = vld [vmem:[%s1220_s14] sm:$0xff]  ;;  %v512_v22 = vsub.s32 2, %v407_v11  ;;  %v516_v23 = vsub.s32 6, %v407_v11  ;;  %v564_v36 = vsub.s32 3, %v407_v11 }
  0x44   : > { %481 = vperm.xlu1 %922, %v398_v3   ;;  %428 = vperm.xlu0 %921, %v398_v3   ;;  %s393_s22 = scalar_lea.vmem %s1350_s2, %s844_s26  ;;  %s387_s1 = scalar_lea.vmem %s1348_s0, %s853_s24  ;;  %v435_v20 = vrot.slane %v1254_v15, %v1249_v12  ;;  %v439_v21 = vrot.slane %v1254_v15, %v412_v13  ;;  %v487_v28 = vrot.slane %v1254_v15, %v1256_v16  ;;  %v568_v37 = vsub.s32 7, %v407_v11 }
  0x45   : > { %v669_v9 = vld [vmem:[%s393_s22] sm:$0xf]  ;;  %v491_v29 = vrot.slane %v1254_v15, %v464_v17  ;;  %v539_v44 = vrot.slane %v1254_v15, %v512_v22  ;;  %v543_v45 = vrot.slane %v1254_v15, %v516_v23  ;;  %v591_v60 = vrot.slane %v1254_v15, %v564_v36  ;;  %s378_s14 = scalar_lea.vmem [#allocation5], %s1368_s15 }
  0x46   : > { %v1251_v14 = vld [vmem:[%s387_s1] sm:$0xff]  ;;  %v445_v32 = vrot.slane %v435_v20, %v1249_v12  ;;  %v449_v33 = vrot.slane %v439_v21, %v1249_v12  ;;  %v497_v41 = vrot.slane %v487_v28, %v1256_v16  ;;  %v595_v61 = vrot.slane %v1254_v15, %v568_v37  ;;  %s854_s1 = sshll.u32 %s1042_s30, 7  ;;  %s718_s11 = sshll.u32 %s378_s14, 4  ;;  %s1301_s11 = int_to_ptr.vmem [resolvable:$true] %s718_s11 }
  0x47   : > { %v409_v18 = vrot.slane %v1251_v14, %v1249_v12  ;;  %v413_v19 = vrot.slane %v1251_v14, %v412_v13  ;;  %v461_v24 = vrot.slane %v1251_v14, %v1256_v16  ;;  %v465_v25 = vrot.slane %v1251_v14, %v464_v17  ;;  %s1299_s16 = scalar_lea.hbm %s1356_s8, %s854_s1  ;;  %s968_s17 = scalar_lea.vmem %s1301_s11, 128 }
  0x48   : > { %924 = vset.pattern.permute.xlu1 %v1055_v4  ;;  %923 = vset.pattern.permute.xlu0 %v1055_v4  ;;  %v513_v34 = vrot.slane %v1251_v14, %v512_v22  ;;  %v517_v35 = vrot.slane %v1251_v14, %v516_v23  ;;  %v501_v42 = vrot.slane %v491_v29, %v1256_v16  ;;  %p969_p9 = scmp.ne.s32.totalorder %s1301_s11, %s968_s17  ;;  %s1057_s30 = smov [#allocation5]  }
  0x49   : > { %533 = vperm.xlu1 %924, %v398_v3   ;;  %507 = vperm.xlu0 %923, %v397_v2   ;;  %v419_v30 = vrot.slane %v409_v18, %v1249_v12  ;;  %v423_v31 = vrot.slane %v413_v19, %v1249_v12  ;;  %v471_v38 = vrot.slane %v461_v24, %v1256_v16  ;;  %s972_s22 = sshll.u32 %s1057_s30, 4  ;;  %s973_s22 = int_to_ptr.vmem [resolvable:$false] %s972_s22 }
  0x4a   : > { %v475_v39 = vrot.slane %v465_v25, %v1256_v16  ;;  %v523_v50 = vrot.slane %v513_v34, %v512_v22  ;;  %v527_v51 = vrot.slane %v517_v35, %v512_v22  ;;  %v565_v52 = vrot.slane %v1251_v14, %v564_v36  ;;  %p970_p0 = pnand %p969_p9, %p1369_p11  ;;  %s974_s24 = scalar_lea.vmem %s973_s22, 256 }
  0x4b   : > { %v569_v53 = vrot.slane %v1251_v14, %v568_v37  ;;  %v549_v58 = vrot.slane %v539_v44, %v512_v22  ;;  %v553_v59 = vrot.slane %v543_v45, %v512_v22  ;;  %v601_v10 = vrot.slane %v591_v60, %v564_v36  ;;  %p975_p13 = scmp.lt.s32.totalorder %s1301_s11, %s973_s22  ;;  %p976_p3 = scmp.lt.s32.totalorder %s974_s24, %s968_s17 }
  0x4c   : > { %v605_v11 = vrot.slane %v595_v61, %v564_v36  ;;  %p971_p7 = pneg %p970_p0 }
  0x4d   : > { %925 = vset.pattern.permute.xlu1 %v1056_v5  ;;  %926 = vset.pattern.permute.xlu0 %v1056_v5  ;;  %p977_p6 = por %p976_p3, %p975_p13 }
  0x4e   : > { %559 = vperm.xlu1 %925, %v397_v2   ;;  %585 = vperm.xlu0 %926, %v398_v3  }
  0x4f   : > { %p978_p4 = pnand %p977_p6, %p971_p7 }
  0x52   : > { %927 = vset.pattern.permute.xlu1 %v1054_v1  ;;  %928 = vset.pattern.permute.xlu0 %v1053_v0 }
  0x53   : > { %613 = vperm.xlu1 %927, %v610_v6   ;;  %640 = vperm.xlu0 %928, %v399_v7  }
  0x57   : > { %626 = vperm.xlu1 %927, %v399_v7   ;;  %929 = vset.pattern.permute.xlu0 %v1054_v1 }
  0x5b   : > { %658 = vperm.xlu1 %927, %v655_v8   ;;  %v575_v8 = vrot.slane %v565_v52, %v564_v36 }
  0x5f   : > { %672 = vperm.xlu1 %927, %v669_v9   ;;  %v579_v9 = vrot.slane %v569_v53, %v564_v36 }
  0xbf   : > { %v456_v26 = vpop.permute.xlu1 %455  ;;  %v403_v27 = vpop.permute.xlu0 %402 }
  0xc0   : > { %v424_v46 = vmul.f32 %v419_v30, %v403_v27  ;;  %v425_v47 = vmul.f32 %v423_v31, %v403_v27  ;;  %v476_v54 = vmul.f32 %v471_v38, %v456_v26  ;;  %v477_v55 = vmul.f32 %v475_v39, %v456_v26 }
  0xc3   : > { %v482_v40 = vpop.permute.xlu1 %481  ;;  %v429_v43 = vpop.permute.xlu0 %428 }
  0xc4   : > { %v450_v48 = vmul.f32 %v445_v32, %v429_v43  ;;  %v451_v49 = vmul.f32 %v449_v33, %v429_v43  ;;  %v502_v62 = vmul.f32 %v497_v41, %v482_v40  ;;  %v503_v63 = vmul.f32 %v501_v42, %v482_v40 }
  0xc6   : > { %v452_v56 = vadd.f32 %v450_v48, %v424_v46  ;;  %v453_v57 = vadd.f32 %v451_v49, %v425_v47 }
  0xc8   : > { %v478_v0 = vadd.f32 %v476_v54, %v452_v56  ;;  %v479_v1 = vadd.f32 %v477_v55, %v453_v57  ;;  %v534_v2 = vpop.permute.xlu1 %533  ;;  %v508_v3 = vpop.permute.xlu0 %507 }
  0xc9   : > { %v528_v4 = vmul.f32 %v523_v50, %v508_v3  ;;  %v529_v5 = vmul.f32 %v527_v51, %v508_v3  ;;  %v554_v13 = vmul.f32 %v549_v58, %v534_v2  ;;  %v555_v17 = vmul.f32 %v553_v59, %v534_v2 }
  0xca   : > { %v504_v6 = vadd.f32 %v502_v62, %v478_v0  ;;  %v505_v7 = vadd.f32 %v503_v63, %v479_v1  ;;  %v689_v1 = vsub.f32 %v1251_v14, %v1254_v15 }
  0xcc   : > { %v530_v18 = vadd.f32 %v528_v4, %v504_v6  ;;  %v531_v19 = vadd.f32 %v529_v5, %v505_v7  ;;  %v691_v2 = vcombine.high %v689_v1, %v689_v1 }
  0xcd   : > { %v560_v20 = vpop.permute.xlu1 %559  ;;  %v586_v21 = vpop.permute.xlu0 %585 }
  0xce   : > { %v556_v22 = vadd.f32 %v554_v13, %v530_v18  ;;  %v557_v23 = vadd.f32 %v555_v17, %v531_v19  ;;  %v580_v24 = vmul.f32 %v575_v8, %v560_v20  ;;  %v581_v25 = vmul.f32 %v579_v9, %v560_v20 }
  0xcf   : > { %v606_v26 = vmul.f32 %v601_v10, %v586_v21  ;;  %v607_v27 = vmul.f32 %v605_v11, %v586_v21 }
  0xd0   : > { %v582_v28 = vadd.f32 %v580_v24, %v556_v22  ;;  %v583_v29 = vadd.f32 %v581_v25, %v557_v23 }
  0xd2   : > { %v614_v30 = vpop.permute.xlu1 %613  ;;  %v608_v31 = vadd.f32 %v606_v26, %v582_v28  ;;  %v609_v32 = vadd.f32 %v607_v27, %v583_v29  ;;  %v641_v40 = vpop.permute.xlu0 %640 }
  0xd4   : > { %v616_v33 = vadd.f32 %v614_v30, %v608_v31  ;;  %v617_v34 = vadd.f32 %v614_v30, %v609_v32 }
  0xd6   : > { %vm618_vm0 = vcmp.ge.f32.partialorder %v616_v33, 0.0  ;;  %vm619_vm1 = vcmp.ge.f32.partialorder %v617_v34, 0.0  ;;  %v620_v35 = vmul.f32 0.01, %v616_v33  ;;  %v621_v36 = vmul.f32 0.01, %v617_v34  ;;  %v627_v37 = vpop.permute.xlu1 %626 }
  0xd8   : > { %v622_v38 = vsel %vm618_vm0, %v616_v33, %v620_v35  ;;  %v623_v39 = vsel %vm619_vm1, %v617_v34, %v621_v36 }
  0xd9   : > { %v632_v41 = vrot.slane %v622_v38, %v1249_v12  ;;  %v636_v42 = vrot.slane %v623_v39, %v1249_v12  ;;  %v646_v43 = vrot.slane %v622_v38, %v1256_v16  ;;  %v650_v44 = vrot.slane %v623_v39, %v1256_v16 }
  0xda   : > { %v659_v49 = vpop.permute.xlu1 %658 }
  0xdb   : > { %v637_v45 = vmul.f32 %v632_v41, %v627_v37  ;;  %v638_v46 = vmul.f32 %v636_v42, %v627_v37  ;;  %v651_v47 = vmul.f32 %v646_v43, %v641_v40  ;;  %v652_v48 = vmul.f32 %v650_v44, %v641_v40 }
  0xdd   : > { %v653_v50 = vadd.f32 %v651_v47, %v637_v45  ;;  %v654_v51 = vadd.f32 %v652_v48, %v638_v46 }
  0xde   : > { %v673_v56 = vpop.permute.xlu1 %672 }
  0xdf   : > { %v661_v52 = vadd.f32 %v659_v49, %v653_v50  ;;  %v662_v53 = vadd.f32 %v659_v49, %v654_v51 }
  0xe1   : > { %vm663_vm2 = vcmp.ge.f32.partialorder %v661_v52, 0.0  ;;  %vm664_vm3 = vcmp.ge.f32.partialorder %v662_v53, 0.0  ;;  %v665_v54 = vmul.f32 0.01, %v661_v52  ;;  %v666_v55 = vmul.f32 0.01, %v662_v53 }
  0xe3   : > { %v667_v57 = vsel %vm663_vm2, %v661_v52, %v665_v54  ;;  %v668_v12 = vsel %vm664_vm3, %v662_v53, %v666_v55 }
  0xe4   : > { %v675_v58 = vadd.f32 %v673_v56, %v667_v57  ;;  %v676_v59 = vadd.f32 %v673_v56, %v668_v12 }
  0xe6   : > { %v845_v60 = vmul.f32 -1.442695, %v675_v58  ;;  %v846_v16 = vmul.f32 -1.442695, %v676_v59 }
  0xe8   : > { %930 = vpow2.f32 %v845_v60 }
  0xe9   : > { %932 = vpow2.f32 %v846_v16 }
  0xf2   : > { %v931_v61 = vpop.eup %930 }
  0xf3   : > { %v933_v62 = vpop.eup %932  ;;  %v683_v63 = vadd.f32 1.0, %v931_v61 }
  0xf4   : > { %v684_v0 = vadd.f32 1.0, %v933_v62 }
  0xf5   : > { %934 = vrcp.f32 %v683_v63 }
  0xf6   : > { %936 = vrcp.f32 %v684_v0 }
  0xff   : > { %v935_v3 = vpop.eup %934 }
 0x100   : > { %v937_v4 = vpop.eup %936  ;;  %v693_v5 = vmul.f32 %v935_v3, %v689_v1 }
 0x101   : > { %v694_v6 = vmul.f32 %v937_v4, %v691_v2 }
 0x103   : > { %v697_v7 = vcombine.low %v693_v5, %v694_v6 }
 0x105   : > { %v699_v8 = vadd.f32 %v697_v7, %v1254_v15 }
 0x107   : > { %700 = vst [vmem:[%s378_s14] sm:$0xff] %v699_v8 }
 0x108   : > { %981 = shalt.err (!%p978_p4)
}
 0x109   : > { %s982_s23 = scalar_lea.hbm %s1299_s16, 128  ;;  %s986_s15 = scalar_lea.hbm %s1356_s8, 256 }
 0x10a   : > { %p983_p10 = scmp.ne.s32.totalorder %s1299_s16, %s982_s23  ;;  %p987_p2 = scmp.lt.u32.totalorder %s1299_s16, %s1356_s8 }
 0x10b   : > { %p988_p5 = scmp.lt.u32.totalorder %s986_s15, %s982_s23  ;;  %p990_p9 = scmp.lt.u32.totalorder %s982_s23, %s1299_s16 }
 0x10c   : > { %p984_p12 = pnand %p983_p10, %p1369_p11 }
 0x10d   : > { %p989_p8 = por %p988_p5, %p987_p2 }
 0x10e   : > { %p985_p1 = pneg %p984_p12 }
 0x10f   : > { %p991_p0 = por %p990_p9, %p989_p8 }
 0x111   : > { %p992_p7 = pnand %p991_p0, %p985_p1 }
 0x113   : > { %995 = shalt.err (!%p992_p7)
}
 0x114   : > { %857 = dma.vmem_to_hbm [thread:$0]  (%p1369_p11), %s1301_s11, 128, %s1299_s16, %s702_s21  }
 0x115 PF: > { %s730_s12 = sand.u32 1, %s1030_s27   ;;  %p1370_p13 = scmp.ne.s32.totalorder %s1363_s20, 0 }
 0x116   : > { %p1371_p3 = scmp.ge.s32.totalorder %s1050_s10, 2  ;;  %s731_s17 = scalar_lea.sflag [#allocation4], %s730_s12 }
 0x118   : > { %p864_p6 = pnand %p1371_p3, %p1370_p13 }
 0x11a   : > { %1025 = dma.done.wait (!%p864_p6), %s731_s17, 128  }
 0x11b   : > { %1027 = vsyncadd (!%p864_p6), %s731_s17, 4294967168  ;;  %s24_s10 = sadd.s32 1, %s1050_s10   ;;  %s1372_s27 = smov %s1034_s28 }
 0x11c   : > { %p21_p4 = scmp.ge.s32.totalorder %s24_s10, 4   ;;  %s1373_s28 = smov %s1038_s29 }
 0x11d   : > { %s1374_s29 = smov %s1159_s19  ;;  %s1375_s30 = smov %s1046_s9 }
 0x11e   : > { %s1376_s9 = smov %s1378_s13  ;;  %23 = sbr.rel (!%p21_p4) target bundleno = 8 (0x8), region = 103 }
 0x125   :  { %736 = vsyncpa [#allocation3], 1 }
 0x126   :  { %738 = vsyncpa [#allocation3 + $0x1], 1 }
 0x127   :  { %739 = vsyncpa [#allocation4], 1 }
 0x128   :  { %741 = vsyncpa [#allocation4 + $0x1], 1 }

</bundles_post_ra>
